<compile_context>
chip_gen: v5e
topology: v5e:2x2
jax: 0.10.0
libtpu: 0.0.40
codegen_flags: <defaults>
</compile_context>

<pallas_src>
import math

import jax
import jax.numpy as jnp
import numpy as np
from jax.experimental import pallas as pl
from jax.experimental.pallas import tpu as pltpu

_LANE = 128
_SUBLANE = 8


def _round_up(x, m):
    return (x + m - 1) // m * m


def _make_kernel(num_idx_cols):
    """Fused embedding kernel: one multi-hot build + one MXU matmul per tile."""

    def kernel(idx_ref, sem_ref, rhs_ref, out_ref):
        # sem_ref already holds semantic embeddings placed at their column
        # offset inside the fused contraction dim (zeros elsewhere).
        lhs = sem_ref[...]                                      # (tile, Kp) f32
        idx = idx_ref[...]                                      # (tile, C) int32
        iota = jax.lax.broadcasted_iota(jnp.int32, lhs.shape, 1)
        for c in range(num_idx_cols):                           # small & static
            lhs = lhs + (iota == idx[:, c:c + 1]).astype(jnp.float32)
        # Single fused MXU matmul: all lookups + Linear + bias + positional.
        out_ref[...] = jnp.dot(lhs, rhs_ref[...],
                               preferred_element_type=jnp.float32)

    return kernel


def input_embedding_forward(token_types, segments, semantic_embeds, categories,
                            tt_tab, seg_tab, cat_tabs, w, bias, pe,
                            tile_tokens=None):
    """Forward of Table2Charts InputEmbedding (eval mode) as a Pallas kernel.

    token_types, segments : (B, S) int
    semantic_embeds       : (B, S, E) f32 (or None / E == 0 to disable compress)
    categories            : (B, S, num_cats) int
    tt_tab                : (num_token_type, H)
    seg_tab               : (num_segment_type, H)
    cat_tabs              : list of (n_i, H)
    w                     : (E, H)  == PyTorch Linear weight transposed (or None)
    bias                  : (H,) or (1, H) Linear bias
    pe                    : (max_len, H) positional buffer (or None); sliced to S here
    """
    B, S = token_types.shape
    H = int(tt_tab.shape[-1])
    num_cats = len(cat_tabs)
    use_linear = (w is not None and semantic_embeds is not None
                  and semantic_embeds.shape[-1] > 0)
    use_pos = pe is not None
    E = int(semantic_embeds.shape[-1]) if use_linear else 0
    T = B * S

    # ---- Pack every table (and the Linear weight) into one row-stacked rhs ----
    idx_tables = [tt_tab, seg_tab] + list(cat_tabs)
    if use_pos:
        idx_tables.append(pe[:S])                       # slice positional buffer here
    if use_linear:
        idx_tables.append(jnp.reshape(bias, (1, H)))    # bias as a constant-one row
    idx_tables = [t.astype(jnp.float32) for t in idx_tables]
    sizes = [int(t.shape[0]) for t in idx_tables]
    offs = np.cumsum([0] + sizes)                       # row offset of each table
    n_index_rows = int(offs[-1])
    K = n_index_rows + E

    Kp = max(_LANE, _round_up(K, _LANE))                # lane-aligned contraction dim
    Hp = max(_LANE, _round_up(H, _LANE))                # lane-dense output dim

    rhs = jnp.zeros((Kp, Hp), jnp.float32)
    rhs = rhs.at[:n_index_rows, :H].set(jnp.concatenate(idx_tables, axis=0))
    if use_linear:
        rhs = rhs.at[n_index_rows:K, :H].set(w.astype(jnp.float32))

    # ---- Offset-adjusted index columns (one multi-hot per token in-kernel) ----
    def flat(a):
        return jnp.reshape(a, (T,)).astype(jnp.int32)

    cols = [flat(token_types) + int(offs[0]),
            flat(segments) + int(offs[1])]
    for i in range(num_cats):
        cols.append(flat(categories[..., i]) + int(offs[2 + i]))
    slot = 2 + num_cats
    if use_pos:
        pos = jnp.broadcast_to(jnp.arange(S, dtype=jnp.int32)[None, :], (B, S))
        cols.append(flat(pos) + int(offs[slot]))
        slot += 1
    if use_linear:
        cols.append(jnp.full((T,), int(offs[slot]), jnp.int32))   # bias one-hot
    idx_all = jnp.stack(cols, axis=-1)                             # (T, C) int32
    C = int(idx_all.shape[-1])

    # ---- Token tiling: flatten (B, S) -> token rows, pad to tile multiple ----
    Tp = _round_up(max(T, _SUBLANE), _SUBLANE)
    if tile_tokens is None:
        # Two "parallel" tiles by default so both v7x TensorCores get work.
        tile_tokens = min(_LANE, _round_up(max(Tp // 2, _SUBLANE), _SUBLANE))
    tile_tokens = max(_SUBLANE, _round_up(min(tile_tokens, Tp), _SUBLANE))
    Tp = _round_up(Tp, tile_tokens)

    if Tp > T:
        # -1 matches no table row -> padded tokens produce zero rows (sliced off).
        idx_all = jnp.pad(idx_all, ((0, Tp - T), (0, 0)), constant_values=-1)

    sem_pad = jnp.zeros((Tp, Kp), jnp.float32)
    if use_linear:
        sem2 = jnp.reshape(semantic_embeds.astype(jnp.float32), (T, E))
        sem_pad = sem_pad.at[:T, n_index_rows:K].set(sem2)

    grid = (Tp // tile_tokens,)
    out = pl.pallas_call(
        _make_kernel(C),
        out_shape=jax.ShapeDtypeStruct((Tp, Hp), jnp.float32),
        grid=grid,
        in_specs=[
            pl.BlockSpec((tile_tokens, C), lambda i: (i, 0)),    # indices per tile
            pl.BlockSpec((tile_tokens, Kp), lambda i: (i, 0)),   # placed semantics
            pl.BlockSpec((Kp, Hp), lambda i: (0, 0)),            # fused tables/weights
        ],
        out_specs=pl.BlockSpec((tile_tokens, Hp), lambda i: (i, 0)),
        compiler_params=pltpu.CompilerParams(dimension_semantics=("parallel",)),
    )(idx_all, sem_pad, rhs)

    return out[:T, :H].reshape(B, S, H)


def make_positional_embedding(max_len, d_model):
    """Matches PositionalEmbedding.__init__ buffer exactly."""
    pe = np.zeros((max_len, d_model), dtype=np.float32)
    position = np.arange(max_len, dtype=np.float32)[:, None]
    div_term = np.exp(
        np.arange(0, d_model, 2, dtype=np.float32) * -(math.log(10000.0) / d_model))
    odd_len = d_model - div_term.shape[-1]
    pe[:, 0::2] = np.sin(position * div_term)
    pe[:, 1::2] = np.cos(position * div_term[:odd_len])
    return jnp.asarray(pe)


def reference_forward(token_types, segments, semantic_embeds, categories,
                      tt_tab, seg_tab, cat_tabs, w, bias, pe):
    S = token_types.shape[1]
    x = tt_tab[token_types] + seg_tab[segments]
    x = x + semantic_embeds @ w + jnp.reshape(bias, (1, 1, -1))
    x = x + pe[None, :S]
    for i, tab in enumerate(cat_tabs):
        x = x + tab[categories[..., i]]
    return x


if __name__ == "__main__":
    # Synthetic ModelConfig: hidden=48, data_len=16 -> embed_hidden=32,
    # embed_len=32, num_token_type=8, num_segment_type=4,
    # num_categories=[5, 7], positional=True, dropout (eval -> identity).
    B, S = 2, 8
    E, H = 32, 32
    NUM_TOKEN_TYPE, NUM_SEGMENT_TYPE = 8, 4
    NUM_CATEGORIES = [5, 7]

    key = jax.random.PRNGKey(0)
    keys = jax.random.split(key, 12)

    # Parameters (deterministic synthetic init; padding_idx=0 rows zeroed).
    tt_tab = jax.random.normal(keys[0], (NUM_TOKEN_TYPE, H), jnp.float32) * 0.02
    tt_tab = tt_tab.at[0].set(0.0)
    seg_tab = jax.random.normal(keys[1], (NUM_SEGMENT_TYPE, H), jnp.float32) * 0.02
    seg_tab = seg_tab.at[0].set(0.0)
    cat_tabs = [
        jax.random.normal(keys[2 + i], (n, H), jnp.float32) * 0.02
        for i, n in enumerate(NUM_CATEGORIES)
    ]
    w = jax.random.normal(keys[6], (E, H), jnp.float32) * (1.0 / math.sqrt(E))
    bias = jax.random.normal(keys[7], (H,), jnp.float32) * 0.01
    pe_full = make_positional_embedding(256, H)  # full (max_len, H) buffer

    # Inputs.
    token_types = jax.random.randint(keys[8], (B, S), 0, NUM_TOKEN_TYPE, jnp.int32)
    segments = jax.random.randint(keys[9], (B, S), 0, NUM_SEGMENT_TYPE, jnp.int32)
    semantic_embeds = jax.random.normal(keys[10], (B, S, E), jnp.float32)
    categories = jnp.stack(
        [jax.random.randint(jax.random.fold_in(keys[11], i), (B, S), 0, n, jnp.int32)
         for i, n in enumerate(NUM_CATEGORIES)],
        axis=-1,
    )  # (B, S, num_cats)

    out = input_embedding_forward(token_types, segments, semantic_embeds, categories,
                                  tt_tab, seg_tab, cat_tabs, w, bias, pe_full)
    out = jax.block_until_ready(out)

    ref = reference_forward(token_types, segments, semantic_embeds, categories,
                            tt_tab, seg_tab, cat_tabs, w, bias, pe_full)
    np.testing.assert_allclose(np.asarray(out), np.asarray(ref), rtol=1e-5, atol=1e-5)

    print("KERNEL_OK")
</pallas_src>

<mosaic_0001>
module attributes {stable_mosaic.version = 11 : i64} {
  func.func @kernel(%arg0: i32, %arg1: memref<8x6xi32, #tpu.memory_space<vmem>>, %arg2: memref<8x128xf32, #tpu.memory_space<vmem>>, %arg3: memref<128x128xf32, #tpu.memory_space<vmem>>, %arg4: memref<8x128xf32, #tpu.memory_space<vmem>>) attributes {dimension_semantics = [#tpu.dimension_semantics<parallel>], iteration_bounds = array<i64: 2>, scalar_prefetch = 0 : i64, scratch_operands = 0 : i64, tpu.core_type = #tpu.core_type<tc>, window_params = [{transform_indices = @transform_0, window_bounds = array<i64: 8, 6>}, {transform_indices = @transform_1, window_bounds = array<i64: 8, 128>}, {pipeline_mode = #tpu.pipeline_mode<synchronous>, transform_indices = @transform_2, window_bounds = array<i64: 128, 128>}, {transform_indices = @transform_3, window_bounds = array<i64: 8, 128>}]} {
    %c0 = arith.constant 0 : index
    %c0_0 = arith.constant 0 : index
    %0 = vector.load %arg2[%c0, %c0_0] : memref<8x128xf32, #tpu.memory_space<vmem>>, vector<8x128xf32>
    %c0_1 = arith.constant 0 : index
    %c0_2 = arith.constant 0 : index
    %1 = vector.load %arg1[%c0_1, %c0_2] : memref<8x6xi32, #tpu.memory_space<vmem>>, vector<8x6xi32>
    %2 = tpu.iota {dimensions = array<i32: 1>} : vector<8x128xi32>
    %3 = vector.extract_strided_slice %1 {offsets = [0, 0], sizes = [8, 1], strides = [1, 1]} : vector<8x6xi32> to vector<8x1xi32>
    %4 = vector.broadcast %3 : vector<8x1xi32> to vector<8x128xi32>
    %5 = arith.cmpi eq, %2, %4 : vector<8x128xi32>
    %6 = arith.extui %5 : vector<8x128xi1> to vector<8x128xi32>
    %7 = arith.sitofp %6 : vector<8x128xi32> to vector<8x128xf32>
    %8 = arith.addf %0, %7 : vector<8x128xf32>
    %9 = vector.extract_strided_slice %1 {offsets = [0, 1], sizes = [8, 1], strides = [1, 1]} : vector<8x6xi32> to vector<8x1xi32>
    %10 = vector.broadcast %9 : vector<8x1xi32> to vector<8x128xi32>
    %11 = arith.cmpi eq, %2, %10 : vector<8x128xi32>
    %12 = arith.extui %11 : vector<8x128xi1> to vector<8x128xi32>
    %13 = arith.sitofp %12 : vector<8x128xi32> to vector<8x128xf32>
    %14 = arith.addf %8, %13 : vector<8x128xf32>
    %15 = vector.extract_strided_slice %1 {offsets = [0, 2], sizes = [8, 1], strides = [1, 1]} : vector<8x6xi32> to vector<8x1xi32>
    %16 = vector.broadcast %15 : vector<8x1xi32> to vector<8x128xi32>
    %17 = arith.cmpi eq, %2, %16 : vector<8x128xi32>
    %18 = arith.extui %17 : vector<8x128xi1> to vector<8x128xi32>
    %19 = arith.sitofp %18 : vector<8x128xi32> to vector<8x128xf32>
    %20 = arith.addf %14, %19 : vector<8x128xf32>
    %21 = vector.extract_strided_slice %1 {offsets = [0, 3], sizes = [8, 1], strides = [1, 1]} : vector<8x6xi32> to vector<8x1xi32>
    %22 = vector.broadcast %21 : vector<8x1xi32> to vector<8x128xi32>
    %23 = arith.cmpi eq, %2, %22 : vector<8x128xi32>
    %24 = arith.extui %23 : vector<8x128xi1> to vector<8x128xi32>
    %25 = arith.sitofp %24 : vector<8x128xi32> to vector<8x128xf32>
    %26 = arith.addf %20, %25 : vector<8x128xf32>
    %27 = vector.extract_strided_slice %1 {offsets = [0, 4], sizes = [8, 1], strides = [1, 1]} : vector<8x6xi32> to vector<8x1xi32>
    %28 = vector.broadcast %27 : vector<8x1xi32> to vector<8x128xi32>
    %29 = arith.cmpi eq, %2, %28 : vector<8x128xi32>
    %30 = arith.extui %29 : vector<8x128xi1> to vector<8x128xi32>
    %31 = arith.sitofp %30 : vector<8x128xi32> to vector<8x128xf32>
    %32 = arith.addf %26, %31 : vector<8x128xf32>
    %33 = vector.extract_strided_slice %1 {offsets = [0, 5], sizes = [8, 1], strides = [1, 1]} : vector<8x6xi32> to vector<8x1xi32>
    %34 = vector.broadcast %33 : vector<8x1xi32> to vector<8x128xi32>
    %35 = arith.cmpi eq, %2, %34 : vector<8x128xi32>
    %36 = arith.extui %35 : vector<8x128xi1> to vector<8x128xi32>
    %37 = arith.sitofp %36 : vector<8x128xi32> to vector<8x128xf32>
    %38 = arith.addf %32, %37 : vector<8x128xf32>
    %c0_3 = arith.constant 0 : index
    %c0_4 = arith.constant 0 : index
    %39 = vector.load %arg3[%c0_3, %c0_4] : memref<128x128xf32, #tpu.memory_space<vmem>>, vector<128x128xf32>
    %cst = arith.constant dense<0.000000e+00> : vector<8x128xf32>
    %40 = tpu.matmul %38, %39, %cst {dimension_numbers = #tpu.dot_dimension_numbers<[1], [0], [0], [1], [0, 0, 1, 1], [], []>} : vector<8x128xf32>, vector<128x128xf32>, vector<8x128xf32> -> vector<8x128xf32>
    %c0_5 = arith.constant 0 : index
    %c0_6 = arith.constant 0 : index
    %41 = vector.load %arg4[%c0_5, %c0_6] : memref<8x128xf32, #tpu.memory_space<vmem>>, vector<8x128xf32>
    tpu.vector_store %arg4[%c0_5, %c0_6], %40 {strides = array<i32>} : memref<8x128xf32, #tpu.memory_space<vmem>>, vector<8x128xf32>,
    return
  }
  func.func @transform_0(%arg0: i32) -> (i32, i32) {
    %c0_i32 = arith.constant 0 : i32
    %c0_i32_0 = arith.constant 0 : i32
    return %arg0, %c0_i32 : i32, i32
  }
  func.func @transform_1(%arg0: i32) -> (i32, i32) {
    %c0_i32 = arith.constant 0 : i32
    %c0_i32_0 = arith.constant 0 : i32
    return %arg0, %c0_i32 : i32, i32
  }
  func.func @transform_2(%arg0: i32) -> (i32, i32) {
    %c0_i32 = arith.constant 0 : i32
    %c0_i32_0 = arith.constant 0 : i32
    %c0_i32_1 = arith.constant 0 : i32
    return %c0_i32, %c0_i32_0 : i32, i32
  }
  func.func @transform_3(%arg0: i32) -> (i32, i32) {
    %c0_i32 = arith.constant 0 : i32
    %c0_i32_0 = arith.constant 0 : i32
    return %arg0, %c0_i32 : i32, i32
  }
}

</mosaic_0001>

<bundles_post_ra>
// kernel: tpu_custom_call.1
= control target key start
LH: loop header
LB: loop body
LE: loop exit
PB: predicated region body
PF: predicated region fallthrough
CT: control target
= control target key end

     0   :  { %8 = vsyncpa [#allocation3], 0  ;;  %s700_s0 = inlined_call_operand.vmem [shape: s32[16,6], index: 0, kind: input, shape index: {}]   ;;  %s701_s1 = inlined_call_operand.vmem [shape: f32[16,128], index: 1, kind: input, shape index: {}]   ;;  %s702_s2 = inlined_call_operand.hbm [shape: f32[128,128], index: 2, kind: input, shape index: {}]   ;;  %s703_s3 = inlined_call_operand.hbm [shape: f32[16,128], index: 3, kind: output, shape index: {}]  }
   0x1   :  { %9 = vsyncpa [#allocation4], 0 }
   0x2   :  { %11 = vsyncpa [#allocation4 + $0x1], 0  ;;  %s595_s12 = smov 0   ;;  %s597_s13 = smov 0  }
   0x3   :  { %s599_s14 = smov 0   ;;  %s601_s15 = smov 0  }
   0x4 LB: > { %s616_s16 = sadd.s32 4294967295, %s563_s15   ;;  %s382_s17 = sadd.s32 4294967294, %s563_s15   ;;  %s563_s15 = sphi %s601_s15, %s709_s15   ;;  %s559_s14 = sphi %s599_s14, %s708_s14   ;;  %s555_s13 = sphi %s597_s13, %s707_s13   ;;  %s551_s12 = sphi %s595_s12, %s706_s12  }
   0x5   : > { %s620_s18 = sadd.s32 1, %s563_s15   ;;  %s97_s19 = sadd.s32 1, %s559_s14 }
   0x6   : > { %s94_s20 = ssub.s32 %s563_s15, %s620_s18  ;;  %p107_p0 = scmp.ne.s32.totalorder %s559_s14, %s555_s13 }
   0x7   : > { %p95_p1 = scmp.eq.s32.totalorder %s94_s20, 0  ;;  %p108_p2 = scmp.eq.s32.totalorder %s616_s16, 1 }
   0x8   : > { %p113_p3 = scmp.ne.s32.totalorder %s555_s13, %s551_s12  ;;  %p114_p4 = scmp.eq.s32.totalorder %s382_s17, 1 }
   0x9   : > { %s631_s21 = scalar_select %p95_p1, %s559_s14, %s97_s19  }
   0xa   : > { %p633_p5 = por %p108_p2, %p107_p0  ;;  %p637_p6 = por %p114_p4, %p113_p3 }
   0xb   : > { %p383_p7 = scmp.ge.s32.totalorder %s563_s15, 1  ;;  %p121_p8 = scmp.lt.s32.totalorder %s563_s15, 3 }
   0xc   : > { %p415_p9 = scmp.eq.s32.totalorder %s616_s16, 0  ;;  %s132_s26 = sshll.u32 %s702_s2, 4  ;;  %s133_s26 = int_to_ptr.hbm [resolvable:$true] %s132_s26 }
   0xd   : > { %p122_p10 = pnand %p383_p7, %p121_p8  ;;  %s565_s27 = smov [#allocation2]  }
   0xe   : > { %s134_s28 = sshll.u32 %s565_s27, 4  ;;  %s566_s29 = smov 128   ;;  %s135_s28 = int_to_ptr.vmem [resolvable:$true] %s134_s28 }
   0xf   : > { %p407_p11 = pneg %p122_p10  ;;  %s567_s30 = smov 8  }
  0x10   : > { %164 = sbr.rel (%p122_p10) target bundleno = 294 (0x126), region = 32 }
  0x11   : > { %p408_p12 = pnand %p415_p9, %p407_p11 }
  0x13   : > { %410 = dma.hbm_to_vmem [thread:$0]  (!%p408_p12), %s133_s26, 2048, %s135_s28, [#allocation3], %s566_s29, %s566_s29, %s567_s30  }
  0x15   : > { %542 = dma.done.wait (%p415_p9), [#allocation3], 2048  }
  0x16   : > { %544 = vsyncadd (%p415_p9), [#allocation3], 4294965248  ;;  %p192_p13 = scmp.lt.s32.totalorder %s616_s16, 1  ;;  %v568_v0 = vmov 0   ;;  %v569_v1 = vmov 2   ;;  %v570_v2 = vmov 4   ;;  %v202_v23 = vlaneseq }
  0x17   : > { %460 = vset.pattern.permute.xlu0 %v568_v0  ;;  %462 = vset.pattern.permute.xlu1 %v569_v1  ;;  %v261_v4 = vld [vmem:[#allocation2 + $0x78] sm:$0xff]  ;;  %v260_v5 = vld [vmem:[#allocation2 + $0x70] sm:$0xff]  ;;  %v259_v6 = vld [vmem:[#allocation2 + $0x68] sm:$0xff]  ;;  %v571_v9 = vmov 1   ;;  %v572_v10 = vmov 3   ;;  %v573_v11 = vmov 5  }
  0x18   : > { %s655_s4 = scalar_select %p192_p13, %s616_s16, 1  ;;  %464 = vset.pattern.permute.xlu2 %v570_v2  ;;  %262 = vmatpush.msra.mxu0 %v261_v4  ;;  %v258_v7 = vld [vmem:[#allocation2 + $0x60] sm:$0xff]  ;;  %v257_v8 = vld [vmem:[#allocation2 + $0x58] sm:$0xff]  ;;  %v256_v12 = vld [vmem:[#allocation2 + $0x50] sm:$0xff]  ;;  %v203_v24 = vand.u32 127, %v202_v23  ;;  %v574_v29 = vmov 0.0  }
  0x19   : > { %v255_v13 = vld [vmem:[#allocation2 + $0x48] sm:$0xff]  ;;  %v254_v14 = vld [vmem:[#allocation2 + $0x40] sm:$0xff]  ;;  %v253_v15 = vld [vmem:[#allocation2 + $0x38] sm:$0xff]  ;;  %s189_s17 = sand.u32 1, %s555_s13   ;;  %s398_s20 = sshll.u32 %s616_s16, 3 }
  0x1a   : > { %s389_s5 = sshll.u32 %s655_s4, 3  ;;  %263 = vmatpush.msra.mxu0 %v260_v5  ;;  %v252_v16 = vld [vmem:[#allocation2 + $0x30] sm:$0xff]  ;;  %v251_v17 = vld [vmem:[#allocation2 + $0x28] sm:$0xff]  ;;  %v250_v18 = vld [vmem:[#allocation2 + $0x20] sm:$0xff]  ;;  %s388_s19 = sshll.u32 %s189_s17, 3 }
  0x1b   : > { %s195_s8 = scalar_lea.vmem %s700_s0, %s389_s5  ;;  %v249_v19 = vld [vmem:[#allocation2 + $0x18] sm:$0xff]  ;;  %v248_v20 = vld [vmem:[#allocation2 + $0x10] sm:$0xff]  ;;  %v247_v21 = vld [vmem:[#allocation2 + $0x8] sm:$0xff]  ;;  %s199_s11 = scalar_lea.vmem %s701_s1, %s389_s5 }
  0x1c   : > { %v201_v3 = vld [vmem:[%s195_s8] sm:$0xff]  ;;  %264 = vmatpush.msra.mxu0 %v259_v6  ;;  %s294_s26 = scalar_lea.hbm %s703_s3, %s398_s20  ;;  %s191_s27 = scalar_lea.vmem [#allocation5], %s388_s19 }
  0x1d   : > { %205 = vperm.xlu0 %460, %v201_v3   ;;  %219 = vperm.xlu1 %462, %v201_v3   ;;  %v246_v22 = vld [vmem:[#allocation2] sm:$0xff]  ;;  %s296_s28 = sshll.u32 %s191_s27, 4  ;;  %s298_s29 = sshll.u32 %s294_s26, 4  ;;  %s297_s28 = int_to_ptr.vmem [resolvable:$true] %s296_s28  ;;  %s299_s29 = int_to_ptr.hbm [resolvable:$true] %s298_s29 }
  0x1e   : > { %233 = vperm.xlu2 %464, %v201_v3   ;;  %265 = vmatpush.msra.mxu0 %v258_v7  ;;  %v200_v28 = vld [vmem:[%s199_s11] sm:$0xff]  ;;  %s284_s30 = scalar_lea.sflag [#allocation4], %s189_s17  ;;  %s511_s4 = sshra.s32 %s299_s29, 4  ;;  %s512_s4 = int_to_ptr.hbm [resolvable:$true] %s511_s4 }
  0x1f   : > { %s513_s5 = scalar_lea.hbm %s512_s4, 8  ;;  %s517_s7 = scalar_lea.hbm %s703_s3, 16 }
  0x20   : > { %266 = vmatpush.msra.mxu0 %v257_v8  ;;  %p514_p0 = scmp.ne.s32.totalorder %s512_s4, %s513_s5  ;;  %p518_p3 = scmp.lt.s32.totalorder %s512_s4, %s703_s3 }
  0x21   : > { %p519_p4 = scmp.lt.s32.totalorder %s517_s7, %s513_s5 }
  0x22   : > { %267 = vmatpush.msra.mxu0 %v256_v12  ;;  %p515_p1 = pnand %p514_p0, %p633_p5 }
  0x23   : > { %p520_p7 = por %p519_p4, %p518_p3 }
  0x24   : > { %268 = vmatpush.msra.mxu0 %v255_v13  ;;  %p516_p2 = pneg %p515_p1 }
  0x25   : > { %461 = vset.pattern.permute.xlu0 %v571_v9  ;;  %463 = vset.pattern.permute.xlu1 %v572_v10 }
  0x26   : > { %212 = vperm.xlu0 %461, %v201_v3   ;;  %226 = vperm.xlu1 %463, %v201_v3   ;;  %p521_p8 = pnand %p520_p7, %p516_p2 }
  0x27   : > { %465 = vset.pattern.permute.xlu2 %v573_v11  ;;  %269 = vmatpush.msra.mxu0 %v254_v14 }
  0x28   : > { %240 = vperm.xlu2 %465, %v201_v3  }
  0x29   : > { %270 = vmatpush.msra.mxu0 %v253_v15 }
  0x2b   : > { %271 = vmatpush.msra.mxu0 %v252_v16 }
  0x2d   : > { %272 = vmatpush.msra.mxu0 %v251_v17 }
  0x2e   : > { %466 = vset.pattern.permute.xlu0 %v573_v11 }
  0x2f   : > { %273 = vmatpush.msra.mxu0 %v250_v18 }
  0x31   : > { %274 = vmatpush.msra.mxu0 %v249_v19 }
  0x33   : > { %275 = vmatpush.msra.mxu0 %v248_v20 }
  0x35   : > { %276 = vmatpush.msra.mxu0 %v247_v21 }
  0x37   : > { %277 = vmatpush.msra.mxu0 %v246_v22 }
  0x78   : > { %v234_v27 = vpop.permute.xlu2 %233 }
  0x79   : > { %vm235_vm4 = vcmp.eq.s32.totalorder %v203_v24, %v234_v27 }
  0x7a   : > { %v395_v41 = vsel %vm235_vm4, 1.0, %v574_v29 }
  0x82   : > { %v241_v35 = vpop.permute.xlu2 %240 }
  0x83   : > { %vm242_vm5 = vcmp.eq.s32.totalorder %v203_v24, %v241_v35 }
  0x84   : > { %v396_v42 = vsel %vm242_vm5, 1.0, %v574_v29 }
  0x8f   : > { %v206_v25 = vpop.permute.xlu0 %205  ;;  %v220_v26 = vpop.permute.xlu1 %219 }
  0x90   : > { %vm207_vm0 = vcmp.eq.s32.totalorder %v203_v24, %v206_v25  ;;  %vm221_vm1 = vcmp.eq.s32.totalorder %v203_v24, %v220_v26 }
  0x91   : > { %v391_v30 = vsel %vm207_vm0, 1.0, %v574_v29  ;;  %v393_v37 = vsel %vm221_vm1, 1.0, %v574_v29 }
  0x92   : > { %v210_v33 = vadd.f32 %v391_v30, %v200_v28 }
  0x98   : > { %v213_v31 = vpop.permute.xlu0 %212  ;;  %v227_v32 = vpop.permute.xlu1 %226 }
  0x99   : > { %vm214_vm2 = vcmp.eq.s32.totalorder %v203_v24, %v213_v31  ;;  %vm228_vm3 = vcmp.eq.s32.totalorder %v203_v24, %v227_v32 }
  0x9a   : > { %v392_v34 = vsel %vm214_vm2, 1.0, %v574_v29  ;;  %v394_v38 = vsel %vm228_vm3, 1.0, %v574_v29 }
  0x9b   : > { %v217_v36 = vadd.f32 %v392_v34, %v210_v33 }
  0x9d   : > { %v224_v39 = vadd.f32 %v393_v37, %v217_v36 }
  0x9f   : > { %v231_v40 = vadd.f32 %v394_v38, %v224_v39 }
  0xa1   : > { %v238_v43 = vadd.f32 %v395_v41, %v231_v40 }
  0xa3   : > { %v245_v44 = vadd.f32 %v396_v42, %v238_v43 }
  0xa5   : > { %278 = vmatmul.f32.vlgmr.msra.gmra.mxu0 %v245_v44 }
 0x122   : > { %v279_v45 = vpop.f32.mrf.mxu0 }
 0x123   : > { %282 = vst [vmem:[%s191_s27] sm:$0xff] %v279_v45 }
 0x124   : > { %524 = shalt.err (!%p521_p8)
}
 0x125   : > { %405 = dma.vmem_to_hbm [thread:$0]  (%p633_p5), %s297_s28, 128, %s299_s29, %s284_s30  }
 0x126 PF: > { %p417_p9 = scmp.ge.s32.totalorder %s563_s15, 2  ;;  %s310_s10 = sand.u32 1, %s551_s12  }
 0x127   : > { %s311_s11 = scalar_lea.sflag [#allocation4], %s310_s10 }
 0x128   : > { %p412_p10 = pnand %p417_p9, %p637_p6 }
 0x12a   : > { %p413_p11 = pneg %p412_p10 }
 0x12c   : > { %546 = dma.done.wait (%p413_p11), %s311_s11, 128  }
 0x12d   : > { %548 = vsyncadd (%p413_p11), %s311_s11, 4294967168  ;;  %p14_p12 = scmp.ge.s32.totalorder %s620_s18, 4   ;;  %s706_s12 = smov %s555_s13 }
 0x12e   : > { %s707_s13 = smov %s559_s14  ;;  %s708_s14 = smov %s631_s21 }
 0x12f   : > { %s709_s15 = smov %s620_s18  ;;  %16 = sbr.rel (!%p14_p12) target bundleno = 4 (0x4), region = 75 }
 0x134   :  { %317 = vsyncpa [#allocation3], 1 }
 0x135   :  { %319 = vsyncpa [#allocation3 + $0x1], 1 }
 0x136   :  { %320 = vsyncpa [#allocation4], 1 }
 0x137   :  { %322 = vsyncpa [#allocation4 + $0x1], 1 }

</bundles_post_ra>
